<compile_context>
chip_gen: v5e
topology: v5e:2x2
jax: 0.10.0
libtpu: 0.0.40
codegen_flags: <defaults>
</compile_context>

<pallas_src>
import math

import jax
import jax.numpy as jnp
from jax.experimental import pallas as pl
from jax.experimental.pallas import tpu as pltpu

_TWO_PI = 2.0 * math.pi


def _gfft1d_kernel(x_ref, b_ref, out_ref):
    # x_ref:   (TR, 1)   one flattened input value per row (row = b*N + n)
    # b_ref:   (1, M)    Gaussian projection row
    # out_ref: (TR, 2M)  [sin | cos] features, lane-dense last dim
    m = b_ref.shape[1]
    # Hoist the 2*pi scale onto b (M multiplies) instead of the (TR, M) proj.
    b_scaled = b_ref[...] * _TWO_PI                    # (1, M)
    # Exact VPU broadcast outer product (no MXU, no bf16 splitting).
    proj = x_ref[...] * b_scaled                       # (TR, 1)*(1, M) -> (TR, M)
    # Two direct half-tile stores; no concatenate temporary.
    # TODO(synk): if bundle profiling shows VALU saturation, share the sin/cos
    # range reduction instead of two independent transcendental calls.
    out_ref[:, :m] = jnp.sin(proj)
    out_ref[:, m:] = jnp.cos(proj)


def _round_up(v, m):
    return ((v + m - 1) // m) * m


def _default_block_rows(total_rows, m):
    """Rows (of the B*N flattened input) handled per grid step."""
    # Double-buffered output block = 2 * TR * 2M * 4 bytes; keep it ~4 MiB so
    # the whole pipeline (plus sin/cos temporaries and the lane-padded x block)
    # fits comfortably even in v7x's smaller VMEM.
    budget = 4 * 1024 * 1024
    cap = max(8, (budget // (2 * 2 * m * 4)) // 8 * 8)
    # Keep >= 2 grid steps when possible so v7x's two TensorCores both get work.
    half = max(8, _round_up((total_rows + 1) // 2, 8))
    return min(cap, half)


def gfft1d(x, b_mat, block_rows=None):
    """x: [B, N] (any real dtype), b_mat: [1, M] (M = mapping_size // 2).
    Returns [B, 2*M*N] float32, matching GFFT1D.forward."""
    x = x.astype(jnp.float32)           # PyTorch does x.float()
    b_mat = b_mat.astype(jnp.float32)
    B, N = x.shape
    _, M = b_mat.shape

    R = B * N                           # flattened (batch, width, height=1) rows
    x_rows = x.reshape(R, 1)

    tr = block_rows if block_rows is not None else _default_block_rows(R, M)
    grid = (pl.cdiv(R, tr),)

    # Explicit VMEM budget (v7x has half the VMEM of v5e/v6e): double-buffered
    # x (lane-padded) + out blocks, the b row, and proj/sin/cos temporaries,
    # with 2x headroom, capped at the 32 MiB scoped default.
    step_bytes = 4 * (2 * tr * 128 + 2 * tr * 2 * M + 8 * 128 + 3 * tr * M)
    vmem_limit = int(min(32 * 1024 * 1024, max(4 * 1024 * 1024, 2 * step_bytes)))

    out_flat = pl.pallas_call(
        _gfft1d_kernel,
        out_shape=jax.ShapeDtypeStruct((R, 2 * M), jnp.float32),
        grid_spec=pltpu.PrefetchScalarGridSpec(
            num_scalar_prefetch=0,
            grid=grid,
            in_specs=[
                pl.BlockSpec((tr, 1), lambda r: (r, 0)),    # this step's rows
                pl.BlockSpec((1, M), lambda r: (0, 0)),     # projection row
            ],
            out_specs=pl.BlockSpec((tr, 2 * M), lambda r: (r, 0)),
        ),
        compiler_params=pltpu.CompilerParams(
            dimension_semantics=("parallel",),
            vmem_limit_bytes=vmem_limit,
        ),
        cost_estimate=pl.CostEstimate(
            flops=2 * R * M,
            transcendentals=2 * R * M,
            bytes_accessed=4 * (R + M + R * 2 * M),
        ),
    )(x_rows, b_mat)

    # Glue: (B*N, 2M) -> [B, 2M, N] channel-major flatten == torch.flatten(-3, -1).
    out = jnp.transpose(out_flat.reshape(B, N, 2 * M), (0, 2, 1))
    return out.reshape(B, 2 * M * N)


if __name__ == "__main__":
    key = jax.random.PRNGKey(0)
    k_x, k_b = jax.random.split(key)

    # Small shapes consistent with the module's forward.
    batch, input_size = 2, 8
    mapping_size, scale = 32, 10.0          # GFFT1D(mapping_size=32, scale=10)
    m_half = mapping_size // 2              # parent uses mapping_size // 2

    # Deterministic "parameters": _B = randn((num_input_channels=1, m_half)) * scale
    b_mat = jax.random.normal(k_b, (1, m_half), dtype=jnp.float32) * scale
    x = jax.random.normal(k_x, (batch, input_size), dtype=jnp.float32)

    out = gfft1d(x, b_mat)
    out = jax.block_until_ready(out)

    # Pure-JAX reference of the exact PyTorch math.
    proj = 2.0 * math.pi * x[:, None, :] * b_mat[0][None, :, None]   # (B, M, N)
    ref = jnp.concatenate([jnp.sin(proj), jnp.cos(proj)], axis=1).reshape(batch, -1)

    assert out.shape == (batch, mapping_size * input_size), out.shape
    assert out.dtype == jnp.float32
    max_err = float(jnp.max(jnp.abs(out - ref)))
    # proj reaches O(100) with scale=10; allow a few ULP-of-argument slack
    # between the kernel's and XLA's sin/cos range reduction (the arguments
    # themselves are now bit-identical thanks to the exact VPU multiply).
    assert jnp.allclose(out, ref, atol=2e-4, rtol=2e-4), max_err
    print("KERNEL_OK")
</pallas_src>

<mosaic_0001>
module attributes {stable_mosaic.version = 11 : i64} {
  func.func @_gfft1d_kernel(%arg0: i32, %arg1: memref<8x1xf32, #tpu.memory_space<vmem>>, %arg2: memref<1x16xf32, #tpu.memory_space<vmem>>, %arg3: memref<8x32xf32, #tpu.memory_space<vmem>>) attributes {dimension_semantics = [#tpu.dimension_semantics<parallel>], iteration_bounds = array<i64: 2>, scalar_prefetch = 0 : i64, scratch_operands = 0 : i64, tpu.core_type = #tpu.core_type<tc>, window_params = [{transform_indices = @transform_0, window_bounds = array<i64: 8, 1>}, {pipeline_mode = #tpu.pipeline_mode<synchronous>, transform_indices = @transform_1, window_bounds = array<i64: 1, 16>}, {transform_indices = @transform_2, window_bounds = array<i64: 8, 32>}]} {
    %c0 = arith.constant 0 : index
    %c0_0 = arith.constant 0 : index
    %0 = vector.load %arg2[%c0, %c0_0] : memref<1x16xf32, #tpu.memory_space<vmem>>, vector<1x16xf32>
    %cst = arith.constant 6.28318548 : f32
    %1 = vector.broadcast %cst : f32 to vector<1x16xf32>
    %2 = arith.mulf %0, %1 : vector<1x16xf32>
    %c0_1 = arith.constant 0 : index
    %c0_2 = arith.constant 0 : index
    %3 = vector.load %arg1[%c0_1, %c0_2] : memref<8x1xf32, #tpu.memory_space<vmem>>, vector<8x1xf32>
    %4 = vector.broadcast %3 : vector<8x1xf32> to vector<8x16xf32>
    %5 = vector.broadcast %2 : vector<1x16xf32> to vector<8x16xf32>
    %6 = arith.mulf %4, %5 : vector<8x16xf32>
    %7 = math.sin %6 : vector<8x16xf32>
    %c0_3 = arith.constant 0 : index
    %c0_4 = arith.constant 0 : index
    %8 = vector.load %arg3[%c0_3, %c0_4] : memref<8x32xf32, #tpu.memory_space<vmem>>, vector<8x16xf32>
    tpu.vector_store %arg3[%c0_3, %c0_4], %7 {strides = array<i32>} : memref<8x32xf32, #tpu.memory_space<vmem>>, vector<8x16xf32>,
    %9 = math.cos %6 : vector<8x16xf32>
    %c0_5 = arith.constant 0 : index
    %c16 = arith.constant 16 : index
    %10 = vector.load %arg3[%c0_5, %c16] : memref<8x32xf32, #tpu.memory_space<vmem>>, vector<8x16xf32>
    tpu.vector_store %arg3[%c0_5, %c16], %9 {strides = array<i32>} : memref<8x32xf32, #tpu.memory_space<vmem>>, vector<8x16xf32>,
    return
  }
  func.func @transform_0(%arg0: i32) -> (i32, i32) {
    %c0_i32 = arith.constant 0 : i32
    %c0_i32_0 = arith.constant 0 : i32
    return %arg0, %c0_i32 : i32, i32
  }
  func.func @transform_1(%arg0: i32) -> (i32, i32) {
    %c0_i32 = arith.constant 0 : i32
    %c0_i32_0 = arith.constant 0 : i32
    %c0_i32_1 = arith.constant 0 : i32
    return %c0_i32, %c0_i32_0 : i32, i32
  }
  func.func @transform_2(%arg0: i32) -> (i32, i32) {
    %c0_i32 = arith.constant 0 : i32
    %c0_i32_0 = arith.constant 0 : i32
    return %arg0, %c0_i32 : i32, i32
  }
}

</mosaic_0001>

<bundles_post_ra>
// kernel: tpu_custom_call.1
= control target key start
LH: loop header
LB: loop body
LE: loop exit
PB: predicated region body
PF: predicated region fallthrough
CT: control target
= control target key end

     0   :  { %7 = vsyncpa [#allocation3], 0  ;;  %s837_s0 = inlined_call_operand.vmem [shape: f32[16,1], index: 0, kind: input, shape index: {}]   ;;  %s838_s1 = inlined_call_operand.vmem [shape: f32[1,16], index: 1, kind: input, shape index: {}]   ;;  %s839_s2 = inlined_call_operand.hbm [shape: f32[16,32], index: 2, kind: output, shape index: {}]  }
   0x1   :  { %9 = vsyncpa [#allocation3 + $0x1], 0  ;;  %s694_s9 = smov 0   ;;  %s696_s10 = smov 0  }
   0x2   :  { %s698_s11 = smov 0   ;;  %s700_s12 = smov 0  }
   0x3 LB: > { %s715_s13 = sadd.s32 4294967295, %s669_s12   ;;  %s543_s14 = sadd.s32 4294967294, %s669_s12   ;;  %s669_s12 = sphi %s700_s12, %s845_s12   ;;  %s665_s11 = sphi %s698_s11, %s844_s11   ;;  %s661_s10 = sphi %s696_s10, %s843_s10   ;;  %s657_s9 = sphi %s694_s9, %s842_s9  }
   0x4   : > { %s719_s15 = sadd.s32 1, %s669_s12   ;;  %s69_s16 = sadd.s32 1, %s665_s11 }
   0x5   : > { %s66_s17 = ssub.s32 %s669_s12, %s719_s15  ;;  %p79_p0 = scmp.ne.s32.totalorder %s665_s11, %s661_s10 }
   0x6   : > { %p67_p1 = scmp.eq.s32.totalorder %s66_s17, 0  ;;  %p80_p2 = scmp.eq.s32.totalorder %s715_s13, 1 }
   0x7   : > { %p85_p3 = scmp.ne.s32.totalorder %s661_s10, %s657_s9  ;;  %p86_p4 = scmp.eq.s32.totalorder %s543_s14, 1 }
   0x8   : > { %s730_s18 = scalar_select %p67_p1, %s665_s11, %s69_s16  }
   0x9   : > { %p732_p5 = por %p80_p2, %p79_p0  ;;  %p736_p6 = por %p86_p4, %p85_p3 }
   0xa   : > { %p546_p7 = scmp.ge.s32.totalorder %s669_s12, 1  ;;  %p114_p8 = scmp.lt.s32.totalorder %s669_s12, 3 }
   0xc   : > { %p115_p9 = pnand %p546_p7, %p114_p8 }
   0xd   : > { %p135_p10 = scmp.lt.s32.totalorder (!%p115_p9), %s715_s13, 1  ;;  %s132_s28 = sand.u32 (!%p115_p9), 1, %s661_s10  }
   0xe   : > { %118 = sbr.rel (%p115_p9) target bundleno = 355 (0x163), region = 28  ;;  %s547_s29 = sshll.u32 (!%p115_p9), %s132_s28, 3 }
   0xf   : > { %s678_s30 = smov (!%p115_p9), 16   ;;  %s134_s3 = scalar_lea.vmem (!%p115_p9), [#allocation2], %s547_s29 }
  0x10   : > { %s556_s4 = sshll.u32 (!%p115_p9), %s715_s13, 3  ;;  %s481_s8 = sshll.u32 (!%p115_p9), %s134_s3, 4  ;;  %s482_s8 = int_to_ptr.vmem [resolvable:$true] %s481_s8 }
  0x11   : > { %s479_s7 = scalar_lea.hbm (!%p115_p9), %s839_s2, %s556_s4  ;;  %s469_s16 = scalar_lea.sflag (!%p115_p9), [#allocation3], %s132_s28 }
  0x12   : > { %s483_s14 = sshll.u32 (!%p115_p9), %s479_s7, 4  ;;  %s627_s23 = scalar_lea.hbm (!%p115_p9), %s839_s2, 16  ;;  %s484_s14 = int_to_ptr.hbm [resolvable:$true] %s483_s14 }
  0x13   : > { %v671_v0 = vmov 0   ;;  %s136_s21 = scalar_select %p135_p10, %s715_s13, 1  ;;  %v139_v2 = vld [vmem:[%s838_s1] sm:$0x1]  ;;  %v672_v18 = vmov 683565275  }
  0x14   : > { %606 = vset.pattern.permute.xlu0 %v671_v0  ;;  %v140_v3 = vmul.f32 6.2831855, %v139_v2  ;;  %v673_v20 = vmov 2475754826   ;;  %v674_v22 = vmov 2131351028  }
  0x15   : > { %s548_s22 = sshll.u32 %s136_s21, 3  ;;  %v675_v24 = vmov 2102212464   ;;  %v676_v29 = vmov 920167782   ;;  %s621_s17 = sshra.s32 %s484_s14, 4  ;;  %s622_s17 = int_to_ptr.hbm [resolvable:$true] %s621_s17 }
  0x16   : > { %s138_s25 = scalar_lea.vmem %s837_s0, %s548_s22  ;;  %v148_v4 = vperm.slane %v140_v3, 0  ;;  %v677_v32 = vmov 1326507024   ;;  %s623_s21 = scalar_lea.hbm %s622_s17, 8 }
  0x17   : > { %v141_v1 = vld [vmem:[%s138_s25] sm:$0xff]  ;;  %p624_p11 = scmp.ne.s32.totalorder %s622_s17, %s623_s21  ;;  %p628_p0 = scmp.lt.s32.totalorder %s622_s17, %s839_s2 }
  0x18   : > { %144 = vperm.xlu0 %606, %v141_v1   ;;  %p629_p1 = scmp.lt.s32.totalorder %s627_s23, %s623_s21 }
  0x19   : > { %p625_p12 = pnand %p624_p11, %p732_p5 }
  0x1a   : > { %p630_p2 = por %p629_p1, %p628_p0 }
  0x1b   : > { %p626_p13 = pneg %p625_p12 }
  0x1d   : > { %p631_p3 = pnand %p630_p2, %p626_p13 }
  0x8a   : > { %v145_v5 = vpop.permute.xlu0 %144 }
  0x8b   : > { %v751_v6 = vmul.f32 %v148_v4, %v145_v5 }
  0x8d   : > { %v154_v7 = vand.u32 2139095040, %v751_v6  ;;  %v151_v9 = vand.u32 2147483647, %v751_v6  ;;  %vm153_vm12 = vcmp.lt.s32.totalorder %v751_v6, 0 }
  0x8f   : > { %v155_v8 = vshrl.u32 %v154_v7, 23  ;;  %v158_v12 = vand.u32 8388607, %v151_v9  ;;  %vm152_vm13 = vcmp.le.f32.partialorder %v151_v9, 0.7853982 }
  0x91   : > { %v549_v10 = vadd.s32 4294967169, %v155_v8  ;;  %v159_v15 = vor.u32 8388608, %v158_v12 }
  0x93   : > { %v161_v11 = vadd.s32 1, %v549_v10  ;;  %v759_v34 = vshll.u32 %v159_v15, 8 }
  0x95   : > { %vm162_vm0 = vcmp.gt.s32.totalorder %v161_v11, 0  ;;  %v200_v46 = vand.u32 65535, %v759_v34  ;;  %v201_v48 = vshrl.u32 %v759_v34, 16 }
  0x96   : > { %v163_v13 = vsel %vm162_vm0, %v161_v11, 0 }
  0x97   : > { %v165_v14 = vand.u32 31, %v163_v13  ;;  %v757_v16 = vshrl.u32 %v163_v13, 5 }
  0x99   : > { %v166_v17 = vsub.s32 32, %v165_v14  ;;  %v168_v19 = vshll.u32 %v672_v18, %v165_v14  ;;  %v171_v21 = vshll.u32 %v673_v20, %v165_v14  ;;  %v174_v23 = vshll.u32 %v674_v22, %v165_v14 }
  0x9a   : > { %v177_v25 = vshll.u32 %v675_v24, %v165_v14  ;;  %v180_v31 = vshll.u32 %v676_v29, %v165_v14  ;;  %vm183_vm1 = vcmp.lt.s32.totalorder %v757_v16, 1  ;;  %vm186_vm2 = vcmp.lt.s32.totalorder %v757_v16, 4 }
  0x9b   : > { %v169_v26 = vshrl.u32 %v673_v20, %v166_v17  ;;  %v172_v27 = vshrl.u32 %v674_v22, %v166_v17  ;;  %v175_v28 = vshrl.u32 %v675_v24, %v166_v17  ;;  %v178_v30 = vshrl.u32 %v676_v29, %v166_v17 }
  0x9c   : > { %v181_v33 = vshrl.u32 %v677_v32, %v166_v17  ;;  %vm185_vm3 = vcmp.lt.s32.totalorder %v757_v16, 3  ;;  %vm184_vm4 = vcmp.lt.s32.totalorder %v757_v16, 2  ;;  %v167_v11 = vshrl.u32 %v672_v18, %v166_v17 }
  0x9d   : > { %v170_v35 = vor.u32 %v169_v26, %v168_v19  ;;  %v173_v36 = vor.u32 %v172_v27, %v171_v21  ;;  %v176_v37 = vor.u32 %v175_v28, %v174_v23  ;;  %v179_v38 = vor.u32 %v178_v30, %v177_v25 }
  0x9e   : > { %v182_v39 = vor.u32 %v181_v33, %v180_v31 }
  0x9f   : > { %v191_v40 = vsel %vm183_vm1, %v170_v35, %v173_v36  ;;  %v192_v41 = vsel %vm186_vm2, %v179_v38, 920167782  ;;  %v195_v42 = vsel %vm183_vm1, %v173_v36, %v176_v37  ;;  %v188_v7 = vsel %vm186_vm2, %v176_v37, 2102212464 }
  0xa0   : > { %v193_v43 = vsel %vm185_vm3, %v176_v37, %v192_v41  ;;  %v196_v44 = vsel %vm186_vm2, %v182_v39, 1326507024  ;;  %v187_v20 = vsel %vm183_vm1, %v167_v11, %v170_v35  ;;  %v189_v21 = vsel %vm185_vm3, %v173_v36, %v188_v7 }
  0xa1   : > { %v197_v45 = vsel %vm185_vm3, %v179_v38, %v196_v44  ;;  %v194_v47 = vsel %vm184_vm4, %v191_v40, %v193_v43  ;;  %v190_v18 = vsel %vm184_vm4, %v187_v20, %v189_v21 }
  0xa2   : > { %v198_v49 = vsel %vm184_vm4, %v195_v42, %v197_v45  ;;  %v224_v50 = vand.u32 65535, %v194_v47  ;;  %v225_v51 = vshrl.u32 %v194_v47, 16  ;;  %v244_v30 = vmul.u32 %v759_v34, %v190_v18 }
  0xa3   : > { %v202_v52 = vand.u32 65535, %v198_v49  ;;  %v203_v53 = vshrl.u32 %v198_v49, 16  ;;  %vm306_vm4 = vcmask 130048  }
  0xa4   : > { %v227_v54 = vmul.u32 %v225_v51, %v200_v46  ;;  %v228_v55 = vmul.u32 %v224_v50, %v201_v48  ;;  %v226_v58 = vmul.u32 %v224_v50, %v200_v46  ;;  %v229_v62 = vmul.u32 %v225_v51, %v201_v48 }
  0xa5   : > { %v205_v56 = vmul.u32 %v203_v53, %v200_v46  ;;  %v206_v57 = vmul.u32 %v202_v52, %v201_v48  ;;  %v204_v60 = vmul.u32 %v202_v52, %v200_v46  ;;  %v207_v63 = vmul.u32 %v203_v53, %v201_v48 }
  0xa6   : > { %v230_v59 = vshll.u32 %v227_v54, 16  ;;  %v232_v1 = vshll.u32 %v228_v55, 16  ;;  %v231_v15 = vshrl.u32 %v227_v54, 16  ;;  %v233_v24 = vshrl.u32 %v228_v55, 16 }
  0xa7   : > { %v208_v61 = vshll.u32 %v205_v56, 16  ;;  %v210_v3 = vshll.u32 %v206_v57, 16  ;;  %v209_v22 = vshrl.u32 %v205_v56, 16  ;;  %v211_v26 = vshrl.u32 %v206_v57, 16 }
  0xa8   : > { %vm234_vm5 = vc.u32 %v226_v58, %v230_v59  ;;  %v236_v2 = vadd.s32 %v230_v59, %v226_v58 }
  0xa9   : > { %vm212_vm6 = vc.u32 %v204_v60, %v208_v61  ;;  %v214_v4 = vadd.s32 %v208_v61, %v204_v60  ;;  %v235_v5 = vsel %vm234_vm5, 1, %v671_v0  ;;  %vm294_vm5 = vweird.f32 %v751_v6 }
  0xaa   : > { %v213_v8 = vsel %vm212_vm6, 1, %v671_v0  ;;  %v237_v10 = vadd.s32 %v235_v5, %v229_v62  ;;  %vm238_vm7 = vc.u32 %v236_v2, %v232_v1  ;;  %vm466_vm6 = vcmask 261248  }
  0xab   : > { %v215_v12 = vadd.s32 %v213_v8, %v207_v63  ;;  %vm216_vm8 = vc.u32 %v214_v4, %v210_v3  ;;  %v239_v13 = vsel %vm238_vm7, 1, %v671_v0 }
  0xac   : > { %v217_v14 = vsel %vm216_vm8, 1, %v671_v0  ;;  %v241_v19 = vadd.s32 %v239_v13, %v237_v10  ;;  %v240_v0 = vadd.s32 %v236_v2, %v232_v1 }
  0xad   : > { %v219_v23 = vadd.s32 %v217_v14, %v215_v12 }
  0xae   : > { %v242_v25 = vadd.s32 %v241_v19, %v231_v15 }
  0xaf   : > { %v220_v17 = vadd.s32 %v219_v23, %v209_v22 }
  0xb0   : > { %v243_v27 = vadd.s32 %v242_v25, %v233_v24 }
  0xb1   : > { %v221_v28 = vadd.s32 %v220_v17, %v211_v26 }
  0xb2   : > { %v247_v29 = vadd.s32 1, %v243_v27 }
  0xb3   : > { %vm246_vm9 = vc.u32 %v221_v28, %v240_v0  ;;  %v245_v42 = vadd.s32 %v240_v0, %v221_v28 }
  0xb4   : > { %v248_v31 = vsel %vm246_vm9, %v247_v29, %v243_v27 }
  0xb5   : > { %v249_v32 = vadd.s32 %v248_v31, %v244_v30 }
  0xb7   : > { %v250_v33 = vadd.s32 536870912, %v249_v32 }
  0xb9   : > { %v251_v35 = vshrl.u32 %v250_v33, 30 }
  0xbb   : > { %v252_v36 = vshll.u32 %v251_v35, 30  ;;  %v275_v55 = vsub.s32 4, %v251_v35 }
  0xbd   : > { %v253_v37 = vsub.s32 %v249_v32, %v252_v36  ;;  %v276_v60 = vsel %vm153_vm12, %v275_v55, %v251_v35 }
  0xbe   : > { %v278_v63 = vsel %vm152_vm13, 0, %v276_v60 }
  0xbf   : > { %vm254_vm10 = vcmp.lt.s32.totalorder %v253_v37, 0  ;;  %v255_v38 = vsub.s32 0, %v253_v37  ;;  %v295_v5 = vadd.s32 3, %v278_v63  ;;  %v452_v11 = vand.u32 3, %v278_v63 }
  0xc1   : > { %v256_v39 = vsel %vm254_vm10, %v255_v38, %v253_v37  ;;  %v296_v12 = vand.u32 3, %v295_v5  ;;  %vm453_vm14 = vcmp.lt.s32.totalorder %v452_v11, 2  ;;  %vm454_vm15 = vcmp.eq.s32.totalorder %v452_v11, 0 }
  0xc2   : > { %v257_v40 = vclz %v256_v39  ;;  %vm457_vm0 = vcmp.eq.s32.totalorder %v452_v11, 2 }
  0xc3   : > { %vm297_vm1 = vcmp.lt.s32.totalorder %v296_v12, 2  ;;  %vm298_vm2 = vcmp.eq.s32.totalorder %v296_v12, 0  ;;  %vm301_vm3 = vcmp.eq.s32.totalorder %v296_v12, 2 }
  0xc4   : > { %v550_v41 = vadd.s32 4294967294, %v257_v40 }
  0xc6   : > { %vm551_vm11 = vcmp.lt.s32.totalorder %v550_v41, 0 }
  0xc7   : > { %v260_v16 = vsel %vm551_vm11, 0, %v550_v41 }
  0xc8   : > { %v261_v43 = vsub.s32 32, %v260_v16  ;;  %v265_v44 = vsub.s32 4294967266, %v260_v16  ;;  %v262_v45 = vshll.u32 %v253_v37, %v260_v16 }
  0xca   : > { %v263_v46 = vshrl.u32 %v245_v42, %v261_v43  ;;  %v266_v34 = vadd.s32 127, %v265_v44 }
  0xcc   : > { %v264_v47 = vor.u32 %v263_v46, %v262_v45  ;;  %v267_v48 = vshll.u32 %v266_v34, 23 }
  0xce   : > { %v268_v49 = vor.u32 4788187, %v267_v48  ;;  %v271_v51 = vcvt.s32.f32 %v264_v47 }
  0xd0   : > { %v269_v50 = vand.u32 2147483647, %v268_v49 }
  0xd2   : > { %v272_v52 = vmul.f32 %v271_v51, %v269_v50 }
  0xd4   : > { %v273_v53 = vxor.u32 2147483648, %v272_v52 }
  0xd6   : > { %v274_v54 = vsel %vm153_vm12, %v273_v53, %v272_v52 }
  0xd7   : > { %v277_v56 = vsel %vm152_vm13, %v751_v6, %v274_v54 }
  0xd8   : > { %v279_v57 = vmul.f32 %v277_v56, %v277_v56 }
  0xda   : > { %v280_v58 = vmul.f32 -0.001358992, %v279_v57  ;;  %v287_v59 = vmul.f32 -0.00019511016, %v279_v57 }
  0xdc   : > { %v281_v61 = vadd.f32 0.041655596, %v280_v58  ;;  %v288_v62 = vadd.f32 0.008332121, %v287_v59 }
  0xde   : > { %v282_v1 = vmul.f32 %v281_v61, %v279_v57  ;;  %v289_v2 = vmul.f32 %v288_v62, %v279_v57 }
  0xe0   : > { %v283_v3 = vadd.f32 -0.4999988, %v282_v1  ;;  %v290_v4 = vadd.f32 -0.16666654, %v289_v2 }
  0xe2   : > { %v284_v7 = vmul.f32 %v283_v3, %v279_v57  ;;  %v291_v9 = vmul.f32 %v290_v4, %v279_v57 }
  0xe4   : > { %v285_v8 = vadd.f32 1.0, %v284_v7  ;;  %v292_v10 = vadd.f32 1.0, %v291_v9 }
  0xe6   : > { %v293_v13 = vmul.f32 %v292_v10, %v277_v56  ;;  %v302_v14 = vxor.u32 2147483648, %v285_v8 }
  0xe8   : > { %v299_v15 = vxor.u32 2147483648, %v293_v13  ;;  %v459_v20 = vsel %vm457_vm0, %v302_v14, %v293_v13  ;;  %v303_v22 = vsel %vm301_vm3, %v302_v14, %v293_v13 }
  0xea   : > { %v456_v19 = vsel %vm454_vm15, %v285_v8, %v299_v15  ;;  %v300_v21 = vsel %vm298_vm2, %v285_v8, %v299_v15 }
  0xeb   : > { %v460_v23 = vsel %vm453_vm14, %v456_v19, %v459_v20  ;;  %v304_v24 = vsel %vm297_vm1, %v300_v21, %v303_v22 }
  0xec   : > { %v461_v25 = vsel %vm294_vm5, nan, %v460_v23  ;;  %v305_v26 = vsel %vm294_vm5, nan, %v304_v24 }
  0xed   : > { %463 = vrot.lane.b32.xlu0 %v461_v25, %s678_s30  ;;  %307 = vst.msk [vmem:[%s134_s3] sm:$0xff] %vm306_vm4, %v305_v26 }
 0x15f   : > { %v464_v6 = vpop.permute.xlu0 %463 }
 0x160   : > { %467 = vst.msk [vmem:[%s134_s3] sm:$0xff] %vm466_vm6, %v464_v6 }
 0x161   : > { %634 = shalt.err (!%p631_p3)
}
 0x162   : > { %559 = dma.vmem_to_hbm [thread:$0]  (%p732_p5), %s482_s8, 128, %s484_s14, %s469_s16  }
 0x163 PF: > { %p565_p4 = scmp.ge.s32.totalorder %s669_s12, 2  ;;  %s495_s26 = sand.u32 1, %s657_s9  }
 0x164   : > { %s496_s27 = scalar_lea.sflag [#allocation3], %s495_s26 }
 0x165   : > { %p562_p7 = pnand %p565_p4, %p736_p6 }
 0x167   : > { %p563_p8 = pneg %p562_p7 }
 0x169   : > { %652 = dma.done.wait (%p563_p8), %s496_s27, 128  }
 0x16a   : > { %654 = vsyncadd (%p563_p8), %s496_s27, 4294967168  ;;  %p12_p9 = scmp.ge.s32.totalorder %s719_s15, 4   ;;  %s842_s9 = smov %s661_s10 }
 0x16b   : > { %s843_s10 = smov %s665_s11  ;;  %s844_s11 = smov %s730_s18 }
 0x16c   : > { %s845_s12 = smov %s719_s15  ;;  %14 = sbr.rel (!%p12_p9) target bundleno = 3 (0x3), region = 63 }
 0x171   :  { %502 = vsyncpa [#allocation3], 1 }
 0x172   :  { %504 = vsyncpa [#allocation3 + $0x1], 1 }

</bundles_post_ra>
